<compile_context>
chip_gen: v6e
topology: v6e:2x2x1
jax: 0.10.0
libtpu: 0.0.40
codegen_flags: <defaults>
</compile_context>

<pallas_src>
import jax
import jax.numpy as jnp
from jax.experimental import pallas as pl
from jax.experimental.pallas import tpu as pltpu

BN_EPS = 1e-5
LANE = 128


def linear_block_kernel(xT_ref, w1T_ref, b1_ref, w2fT_ref, b2f_ref, oT_ref):
    # xT_ref   : (in_sz, TB)      bf16  -- batch tile, batch on the lane axis
    # w1T_ref  : (hidden, in_sz)  bf16  -- resident across grid steps
    # b1_ref   : (hidden, 1)      f32
    # w2fT_ref : (out_sz, hidden) bf16  -- BN folded in
    # b2f_ref  : (out_sz, 1)      f32   -- BN folded in
    # oT_ref   : (out_sz, TB)     f32   -- lane-dense stores
    h = jnp.dot(w1T_ref[...], xT_ref[...], preferred_element_type=jnp.float32)
    h = jnp.maximum(h + b1_ref[...], 0.0)          # bias + ReLU in f32 (VPU)
    out = jnp.dot(w2fT_ref[...], h.astype(w2fT_ref.dtype),
                  preferred_element_type=jnp.float32)
    oT_ref[...] = (out + b2f_ref[...]).astype(oT_ref.dtype)


def linear_block(x, params, *, block_b=512, compute_dtype=jnp.bfloat16):
    """x: [B, in_sz] float32. Returns [B, out_sz] float32.

    block_b: max batch-tile width (lanes); must be a multiple of 128.
    Sized well under v7x's 64 MiB VMEM even with double-buffering.
    """
    assert block_b % LANE == 0, "block_b must be a multiple of 128"
    w1, b1 = params["w1"], params["b1"]
    gamma, beta = params["bn_gamma"], params["bn_beta"]
    mean, var = params["bn_mean"], params["bn_var"]
    w2, b2 = params["w2"], params["b2"]

    B, in_sz = x.shape
    hidden = w1.shape[1]
    out_sz = w2.shape[1]

    # ---- Fold inference-mode BatchNorm1d into the second linear (host-side). ----
    scale = (gamma * jax.lax.rsqrt(var + BN_EPS)).reshape(hidden)     # (H,)
    shift = (beta.reshape(hidden) - mean.reshape(hidden) * scale)     # (H,)
    w2f = scale[:, None] * w2                                         # (H, O)
    b2f = shift @ w2 + b2.reshape(out_sz)                             # (O,)

    # ---- bf16 MXU operands; f32 biases. Batch goes on the lane axis. ----
    xT = x.T.astype(compute_dtype)                  # (in_sz, B)
    w1T = w1.T.astype(compute_dtype)                # (H, in_sz)
    w2fT = w2f.T.astype(compute_dtype)              # (O, H)
    b1c = b1.reshape(hidden, 1).astype(jnp.float32)
    b2c = b2f.reshape(out_sz, 1).astype(jnp.float32)

    # ---- Pad batch (lane axis) to a multiple of the tile width. ----
    TB = min(block_b, pl.cdiv(B, LANE) * LANE)
    B_pad = pl.cdiv(B, TB) * TB
    if B_pad != B:
        xT = jnp.pad(xT, ((0, 0), (0, B_pad - B)))

    grid = (B_pad // TB,)

    outT = pl.pallas_call(
        linear_block_kernel,
        out_shape=jax.ShapeDtypeStruct((out_sz, B_pad), jnp.float32),
        grid=grid,
        in_specs=[
            pl.BlockSpec((in_sz, TB), lambda i: (0, i)),       # xT (tiled over batch)
            pl.BlockSpec((hidden, in_sz), lambda i: (0, 0)),   # w1T (resident)
            pl.BlockSpec((hidden, 1), lambda i: (0, 0)),       # b1  (resident)
            pl.BlockSpec((out_sz, hidden), lambda i: (0, 0)),  # w2' (BN folded, resident)
            pl.BlockSpec((out_sz, 1), lambda i: (0, 0)),       # b2' (BN folded, resident)
        ],
        out_specs=pl.BlockSpec((out_sz, TB), lambda i: (0, i)),
        compiler_params=pltpu.CompilerParams(
            dimension_semantics=("parallel",)),
    )(xT, w1T, b1c, w2fT, b2c)

    return outT[:, :B].T                            # back to [B, out_sz]


def init_params(key, in_sz, hidden, out_sz):
    """Deterministic synthetic parameters (shapes match the PyTorch module)."""
    ks = jax.random.split(key, 8)
    return {
        # Linear(in_sz, hidden): stored as [in, out] == W.T of PyTorch's [out, in]
        "w1": jax.random.normal(ks[0], (in_sz, hidden), jnp.float32) * 0.1,
        "b1": jax.random.normal(ks[1], (1, hidden), jnp.float32) * 0.1,
        # BatchNorm1d(hidden) inference-mode parameters / running stats
        "bn_gamma": 1.0 + 0.1 * jax.random.normal(ks[2], (1, hidden), jnp.float32),
        "bn_beta": 0.1 * jax.random.normal(ks[3], (1, hidden), jnp.float32),
        "bn_mean": 0.05 * jax.random.normal(ks[4], (1, hidden), jnp.float32),
        "bn_var": jnp.abs(1.0 + 0.1 * jax.random.normal(ks[5], (1, hidden), jnp.float32)),
        # Linear(hidden, out_sz)
        "w2": jax.random.normal(ks[6], (hidden, out_sz), jnp.float32) * 0.1,
        "b2": jax.random.normal(ks[7], (1, out_sz), jnp.float32) * 0.1,
    }


def linear_block_ref_f32(x, p):
    """Pure-f32 reference (PyTorch eval-mode forward, unfolded BN)."""
    h = jnp.maximum(x @ p["w1"] + p["b1"], 0.0)
    scale = p["bn_gamma"] / jnp.sqrt(p["bn_var"] + BN_EPS)
    h = (h - p["bn_mean"]) * scale + p["bn_beta"]
    return h @ p["w2"] + p["b2"]


def linear_block_ref_bf16(x, p, compute_dtype=jnp.bfloat16):
    """Reference mirroring the kernel numerics (bf16 operands, f32 acc, folded BN)."""
    hidden = p["w1"].shape[1]
    scale = (p["bn_gamma"] * jax.lax.rsqrt(p["bn_var"] + BN_EPS)).reshape(hidden)
    shift = p["bn_beta"].reshape(hidden) - p["bn_mean"].reshape(hidden) * scale
    w2f = scale[:, None] * p["w2"]
    b2f = shift @ p["w2"] + p["b2"].reshape(-1)
    h = jnp.dot(x.astype(compute_dtype), p["w1"].astype(compute_dtype),
                preferred_element_type=jnp.float32) + p["b1"]
    h = jnp.maximum(h, 0.0)
    return jnp.dot(h.astype(compute_dtype), w2f.astype(compute_dtype),
                   preferred_element_type=jnp.float32) + b2f[None, :]


if __name__ == "__main__":
    key = jax.random.PRNGKey(0)
    kx, kp = jax.random.split(key)

    B, in_sz, hidden, out_sz = 200, 32, 64, 16   # small, non-multiple-of-128 batch
    x = jax.random.normal(kx, (B, in_sz), jnp.float32)
    params = init_params(kp, in_sz, hidden, out_sz)

    # Default tiling (single tile after lane padding) and a forced multi-tile grid.
    out = jax.block_until_ready(linear_block(x, params))
    out_tiled = jax.block_until_ready(linear_block(x, params, block_b=128))

    ref_bf16 = linear_block_ref_bf16(x, params)
    ref_f32 = linear_block_ref_f32(x, params)

    assert out.shape == (B, out_sz)
    assert out_tiled.shape == (B, out_sz)
    # Same numerics as the kernel (bf16 operands, f32 accumulate, folded BN).
    assert jnp.max(jnp.abs(out - ref_bf16)) < 1e-3, "mismatch vs bf16 reference"
    assert jnp.max(jnp.abs(out_tiled - ref_bf16)) < 1e-3, "tiled mismatch vs bf16 reference"
    # Module semantics (pure-f32, unfolded BN) within bf16-level tolerance.
    assert jnp.max(jnp.abs(out - ref_f32)) < 1e-1, "mismatch vs f32 module reference"
    print("KERNEL_OK")
</pallas_src>

<mosaic_0001>
module attributes {stable_mosaic.version = 11 : i64} {
  func.func @linear_block_kernel(%arg0: i32, %arg1: memref<32x256xbf16, #tpu.memory_space<vmem>>, %arg2: memref<64x32xbf16, #tpu.memory_space<vmem>>, %arg3: memref<64x1xf32, #tpu.memory_space<vmem>>, %arg4: memref<16x64xbf16, #tpu.memory_space<vmem>>, %arg5: memref<16x1xf32, #tpu.memory_space<vmem>>, %arg6: memref<16x256xf32, #tpu.memory_space<vmem>>) attributes {dimension_semantics = [#tpu.dimension_semantics<parallel>], iteration_bounds = array<i64: 1>, scalar_prefetch = 0 : i64, scratch_operands = 0 : i64, tpu.core_type = #tpu.core_type<tc>, window_params = [{transform_indices = @transform_0, window_bounds = array<i64: 32, 256>}, {pipeline_mode = #tpu.pipeline_mode<synchronous>, transform_indices = @transform_1, window_bounds = array<i64: 64, 32>}, {pipeline_mode = #tpu.pipeline_mode<synchronous>, transform_indices = @transform_2, window_bounds = array<i64: 64, 1>}, {pipeline_mode = #tpu.pipeline_mode<synchronous>, transform_indices = @transform_3, window_bounds = array<i64: 16, 64>}, {pipeline_mode = #tpu.pipeline_mode<synchronous>, transform_indices = @transform_4, window_bounds = array<i64: 16, 1>}, {transform_indices = @transform_5, window_bounds = array<i64: 16, 256>}]} {
    %c0 = arith.constant 0 : index
    %c0_0 = arith.constant 0 : index
    %0 = vector.load %arg2[%c0, %c0_0] : memref<64x32xbf16, #tpu.memory_space<vmem>>, vector<64x32xbf16>
    %c0_1 = arith.constant 0 : index
    %c0_2 = arith.constant 0 : index
    %1 = vector.load %arg1[%c0_1, %c0_2] : memref<32x256xbf16, #tpu.memory_space<vmem>>, vector<32x256xbf16>
    %cst = arith.constant dense<0.000000e+00> : vector<64x256xf32>
    %2 = tpu.matmul %0, %1, %cst {dimension_numbers = #tpu.dot_dimension_numbers<[1], [0], [0], [1], [0, 0, 1, 1], [], []>} : vector<64x32xbf16>, vector<32x256xbf16>, vector<64x256xf32> -> vector<64x256xf32>
    %c0_3 = arith.constant 0 : index
    %c0_4 = arith.constant 0 : index
    %3 = vector.load %arg3[%c0_3, %c0_4] : memref<64x1xf32, #tpu.memory_space<vmem>>, vector<64x1xf32>
    %4 = vector.broadcast %3 : vector<64x1xf32> to vector<64x256xf32>
    %5 = arith.addf %2, %4 : vector<64x256xf32>
    %cst_5 = arith.constant 0.000000e+00 : f32
    %6 = vector.broadcast %cst_5 : f32 to vector<64x256xf32>
    %7 = arith.maximumf %5, %6 : vector<64x256xf32>
    %c0_6 = arith.constant 0 : index
    %c0_7 = arith.constant 0 : index
    %8 = vector.load %arg4[%c0_6, %c0_7] : memref<16x64xbf16, #tpu.memory_space<vmem>>, vector<16x64xbf16>
    %9 = arith.truncf %7 : vector<64x256xf32> to vector<64x256xbf16>
    %cst_8 = arith.constant dense<0.000000e+00> : vector<16x256xf32>
    %10 = tpu.matmul %8, %9, %cst_8 {dimension_numbers = #tpu.dot_dimension_numbers<[1], [0], [0], [1], [0, 0, 1, 1], [], []>} : vector<16x64xbf16>, vector<64x256xbf16>, vector<16x256xf32> -> vector<16x256xf32>
    %c0_9 = arith.constant 0 : index
    %c0_10 = arith.constant 0 : index
    %11 = vector.load %arg5[%c0_9, %c0_10] : memref<16x1xf32, #tpu.memory_space<vmem>>, vector<16x1xf32>
    %12 = vector.broadcast %11 : vector<16x1xf32> to vector<16x256xf32>
    %13 = arith.addf %10, %12 : vector<16x256xf32>
    %c0_11 = arith.constant 0 : index
    %c0_12 = arith.constant 0 : index
    %14 = vector.load %arg6[%c0_11, %c0_12] : memref<16x256xf32, #tpu.memory_space<vmem>>, vector<16x256xf32>
    tpu.vector_store %arg6[%c0_11, %c0_12], %13 {strides = array<i32>} : memref<16x256xf32, #tpu.memory_space<vmem>>, vector<16x256xf32>,
    return
  }
  func.func @transform_0(%arg0: i32) -> (i32, i32) {
    %c0_i32 = arith.constant 0 : i32
    %c0_i32_0 = arith.constant 0 : i32
    return %c0_i32, %arg0 : i32, i32
  }
  func.func @transform_1(%arg0: i32) -> (i32, i32) {
    %c0_i32 = arith.constant 0 : i32
    %c0_i32_0 = arith.constant 0 : i32
    %c0_i32_1 = arith.constant 0 : i32
    return %c0_i32, %c0_i32_0 : i32, i32
  }
  func.func @transform_2(%arg0: i32) -> (i32, i32) {
    %c0_i32 = arith.constant 0 : i32
    %c0_i32_0 = arith.constant 0 : i32
    %c0_i32_1 = arith.constant 0 : i32
    return %c0_i32, %c0_i32_0 : i32, i32
  }
  func.func @transform_3(%arg0: i32) -> (i32, i32) {
    %c0_i32 = arith.constant 0 : i32
    %c0_i32_0 = arith.constant 0 : i32
    %c0_i32_1 = arith.constant 0 : i32
    return %c0_i32, %c0_i32_0 : i32, i32
  }
  func.func @transform_4(%arg0: i32) -> (i32, i32) {
    %c0_i32 = arith.constant 0 : i32
    %c0_i32_0 = arith.constant 0 : i32
    %c0_i32_1 = arith.constant 0 : i32
    return %c0_i32, %c0_i32_0 : i32, i32
  }
  func.func @transform_5(%arg0: i32) -> (i32, i32) {
    %c0_i32 = arith.constant 0 : i32
    %c0_i32_0 = arith.constant 0 : i32
    return %c0_i32, %arg0 : i32, i32
  }
}

</mosaic_0001>

<bundles_post_ra>
// kernel: tpu_custom_call.1
= control target key start
LH: loop header
LB: loop body
LE: loop exit
PB: predicated region body
PF: predicated region fallthrough
CT: control target
= control target key end

     0   :  { %v371_v2 = vmov 0   ;;  %vm122_vm0 = vcmask 261120   ;;  %s469_s0 = inlined_call_operand.vmem [shape: bf16[32,256], index: 0, kind: input, shape index: {}]   ;;  %s470_s1 = inlined_call_operand.vmem [shape: bf16[64,32], index: 1, kind: input, shape index: {}]   ;;  %s471_s2 = inlined_call_operand.vmem [shape: f32[64,1], index: 2, kind: input, shape index: {}]   ;;  %s472_s3 = inlined_call_operand.vmem [shape: bf16[16,64], index: 3, kind: input, shape index: {}]   ;;  %s473_s4 = inlined_call_operand.vmem [shape: f32[16,1], index: 4, kind: input, shape index: {}]   ;;  %s474_s5 = inlined_call_operand.hbm [shape: f32[16,256], index: 5, kind: output, shape index: {}]  }
   0x1   :  { %v338_v0 = vld [vmem:[%s469_s0 + $0x14] ss:$8 sps:$4 sm:$0xff]   ;;  %v340_v1 = vld [vmem:[%s469_s0 + $0x10] ss:$8 sps:$4 sm:$0xff]   ;;  %167 = vmatprep.mubr.bf16.mxu0 %v371_v2  ;;  %336 = vset.pattern.permute.xlu0 %v371_v2  ;;  %v341_v3 = vld [vmem:[%s469_s0 + $0x4] ss:$8 sps:$4 sm:$0xff]  }
   0x2   :  { %147 = vmatprep.subr.bf16.mxu0 %v338_v0  ;;  %337 = vset.pattern.permute.xlu1 %v371_v2  ;;  %v343_v4 = vld [vmem:[%s469_s0] ss:$8 sps:$4 sm:$0xff]   ;;  %v40_v6 = vld [vmem:[%s471_s2 + $0x30] sm:$0xff]  ;;  %v41_v8 = vld [vmem:[%s471_s2 + $0x38] sm:$0xff] }
   0x3   :  { %148 = vmatpush1.bf16.msra.mxu0 %v340_v1  ;;  %287 = vmatprep.mubr.bf16.mxu1 %v371_v2  ;;  %v344_v5 = vld [vmem:[%s470_s1] sm:$0xff]   ;;  %v39_v9 = vld [vmem:[%s471_s2 + $0x28] sm:$0xff] }
   0x4   :  { %149 = vmatprep.subr.bf16.mxu0 %v341_v3  ;;  %74 = vperm.xlu0 %336, %v40_v6   ;;  %v38_v7 = vld [vmem:[%s471_s2 + $0x20] sm:$0xff] }
   0x5   :  { %64 = vperm.xlu1 %337, %v38_v7  }
   0x7   :  { %150 = vmatpush1.bf16.msra.mxu0 %v343_v4 }
   0xa   :  { %326 = vmatmul.mubr.msk.bf16.vlgmr.msra.gmra.mxu0 %vm122_vm0, %v344_v5 }
   0xb   :  { %10 = vsyncpa [#allocation3], 0  ;;  %177 = vmatprep.mubr.bf16.mxu0 %v371_v2  ;;  %79 = vperm.xlu0 %336, %v41_v8   ;;  %v36_v10 = vld [vmem:[%s471_s2 + $0x10] sm:$0xff]  ;;  %v37_v11 = vld [vmem:[%s471_s2 + $0x18] sm:$0xff]  ;;  %vm251_vm1 = vcmask 523264   ;;  %s372_s27 = smov [#allocation2]  }
   0xc   :  { %69 = vperm.xlu1 %337, %v39_v9   ;;  %v345_v12 = vld [vmem:[%s470_s1 + $0x8] sm:$0xff]   ;;  %v34_v13 = vld [vmem:[%s471_s2] sm:$0xff]  ;;  %v346_v17 = vld [vmem:[%s470_s1 + $0x10] sm:$0xff]   ;;  %s307_s28 = sshll.u32 %s372_s27, 4  ;;  %s308_s28 = int_to_ptr.vmem [resolvable:$true] %s307_s28 }
   0xd   :  { %v35_v14 = vld [vmem:[%s471_s2 + $0x8] sm:$0xff]  ;;  %v234_v15 = vld [vmem:[%s473_s4] sm:$0xff]  ;;  %v347_v18 = vld [vmem:[%s470_s1 + $0x18] sm:$0xff]   ;;  %p354_p1 = scmp.lt.s32.totalorder %s308_s28, %s308_s28 }
   0xe   :  { %v235_v16 = vld [vmem:[%s473_s4 + $0x8] sm:$0xff] }
   0xf   :  { %54 = vperm.xlu0 %336, %v36_v10  }
  0x10   :  { %59 = vperm.xlu1 %337, %v37_v11  }
  0x12   :  { %327 = vmatmul.mubr.msk.bf16.gmra.mxu0 %vm122_vm0, %v345_v12 }
  0x13   :  { %187 = vmatprep.mubr.bf16.mxu0 %v371_v2  ;;  %44 = vperm.xlu0 %336, %v34_v13  }
  0x14   :  { %49 = vperm.xlu1 %337, %v35_v14  }
  0x17   :  { %238 = vperm.xlu0 %336, %v234_v15  }
  0x18   :  { %243 = vperm.xlu1 %337, %v235_v16  }
  0x1a   :  { %328 = vmatmul.mubr.msk.bf16.gmra.mxu0 %vm122_vm0, %v346_v17 }
  0x1b   :  { %197 = vmatprep.mubr.bf16.mxu0 %v371_v2 }
  0x22   :  { %329 = vmatmul.mubr.msk.bf16.gmra.mxu0 %vm122_vm0, %v347_v18 }
  0x7f   :  { %v75_v30 = vpop.permute.xlu0 %74 }
  0x80   :  { %v65_v28 = vpop.permute.xlu1 %64 }
  0x86   :  { %v80_v35 = vpop.permute.xlu0 %79 }
  0x87   :  { %v70_v33 = vpop.permute.xlu1 %69 }
  0x8a   :  { %v55_v46 = vpop.permute.xlu0 %54 }
  0x8b   :  { %v60_v41 = vpop.permute.xlu1 %59 }
  0x8e   :  { %v45_v1 = vpop.permute.xlu0 %44 }
  0x8f   :  { %v50_v58 = vpop.permute.xlu1 %49 }
  0xca   :  { %v169_v19 = vpop.f32.mrf.mxu0 }
  0xcb   :  { %v170_v11 = vadd.f32 %v169_v19, %v45_v1 }
  0xcc   :  { %v171_v20 = vpop.f32.mrf.mxu0 }
  0xcd   :  { %v172_v4 = vadd.f32 %v171_v20, %v45_v1  ;;  %v208_v17 = vmax.f32 %v170_v11, 0.0  ;;  %v348_v20 = vld [vmem:[%s472_s3] sm:$0xff]   ;;  %s349_s3 = scalar_lea.vmem %s308_s28, 512 }
  0xce   :  { %v173_v21 = vpop.f32.mrf.mxu0  ;;  %p350_p0 = scmp.ne.s32.totalorder %s308_s28, %s349_s3  ;;  %p355_p2 = scmp.lt.s32.totalorder %s349_s3, %s349_s3 }
  0xcf   :  { %v174_v6 = vadd.f32 %v173_v21, %v50_v58  ;;  %v209_v13 = vmax.f32 %v172_v4, 0.0  ;;  %v239_v21 = vpop.permute.xlu0 %238 }
  0xd0   :  { %v175_v22 = vpop.f32.mrf.mxu0  ;;  %p356_p3 = por %p355_p2, %p354_p1 }
  0xd1   :  { %v176_v62 = vadd.f32 %v175_v22, %v50_v58  ;;  %v210_v14 = vmax.f32 %v174_v6, 0.0 }
  0xd2   :  { %v179_v23 = vpop.f32.mrf.mxu0  ;;  %p357_p4 = pnand %p356_p3, %p350_p0 }
  0xd3   :  { %v180_v2 = vadd.f32 %v179_v23, %v55_v46  ;;  %v211_v9 = vmax.f32 %v176_v62, 0.0  ;;  %v226_v18 = vpack.c.bf16 %v210_v14, %v208_v17 }
  0xd4   :  { %v181_v24 = vpop.f32.mrf.mxu0 }
  0xd5   :  { %v182_v55 = vadd.f32 %v181_v24, %v55_v46  ;;  %v212_v12 = vmax.f32 %v180_v2, 0.0  ;;  %v227_v16 = vpack.c.bf16 %v211_v9, %v209_v13 }
  0xd6   :  { %v183_v25 = vpop.f32.mrf.mxu0 }
  0xd7   :  { %v184_v59 = vadd.f32 %v183_v25, %v60_v41  ;;  %v213_v5 = vmax.f32 %v182_v55, 0.0  ;;  %v244_v25 = vpop.permute.xlu1 %243 }
  0xd8   :  { %v185_v26 = vpop.f32.mrf.mxu0 }
  0xd9   :  { %v186_v49 = vadd.f32 %v185_v26, %v60_v41  ;;  %v214_v7 = vmax.f32 %v184_v59, 0.0 }
  0xda   :  { %v189_v27 = vpop.f32.mrf.mxu0 }
  0xdb   :  { %v190_v53 = vadd.f32 %v189_v27, %v65_v28  ;;  %v215_v63 = vmax.f32 %v186_v49, 0.0  ;;  %v228_v15 = vpack.c.bf16 %v214_v7, %v212_v12 }
  0xdc   :  { %v191_v29 = vpop.f32.mrf.mxu0 }
  0xdd   :  { %v192_v44 = vadd.f32 %v191_v29, %v65_v28  ;;  %v216_v3 = vmax.f32 %v190_v53, 0.0  ;;  %v229_v10 = vpack.c.bf16 %v215_v63, %v213_v5 }
  0xde   :  { %v193_v31 = vpop.f32.mrf.mxu0 }
  0xdf   :  { %v194_v47 = vadd.f32 %v193_v31, %v70_v33  ;;  %v217_v56 = vmax.f32 %v192_v44, 0.0 }
  0xe0   :  { %v195_v32 = vpop.f32.mrf.mxu0 }
  0xe1   :  { %v196_v38 = vadd.f32 %v195_v32, %v70_v33  ;;  %v218_v60 = vmax.f32 %v194_v47, 0.0 }
  0xe2   :  { %v199_v34 = vpop.f32.mrf.mxu0 }
  0xe3   :  { %v200_v42 = vadd.f32 %v199_v34, %v75_v30  ;;  %v219_v50 = vmax.f32 %v196_v38, 0.0  ;;  %v230_v8 = vpack.c.bf16 %v218_v60, %v216_v3 }
  0xe4   :  { %v201_v36 = vpop.f32.mrf.mxu0 }
  0xe5   :  { %v202_v39 = vadd.f32 %v201_v36, %v75_v30  ;;  %v220_v54 = vmax.f32 %v200_v42, 0.0  ;;  %v231_v0 = vpack.c.bf16 %v219_v50, %v217_v56 }
  0xe6   :  { %v203_v37 = vpop.f32.mrf.mxu0 }
  0xe7   :  { %v204_v40 = vadd.f32 %v203_v37, %v80_v35  ;;  %v221_v51 = vmax.f32 %v202_v39, 0.0 }
  0xe8   :  { %v205_v43 = vpop.f32.mrf.mxu0 }
  0xe9   :  { %v206_v45 = vadd.f32 %v205_v43, %v80_v35  ;;  %v222_v48 = vmax.f32 %v204_v40, 0.0 }
  0xeb   :  { %v223_v52 = vmax.f32 %v206_v45, 0.0  ;;  %v232_v61 = vpack.c.bf16 %v222_v48, %v220_v54 }
  0xed   :  { %v233_v57 = vpack.c.bf16 %v223_v52, %v221_v51 }
  0xef   :  { %263 = vmatprep.subr.bf16.mxu1 %v233_v57 }
  0xf0   :  { %264 = vmatpush1.bf16.msra.mxu1 %v232_v61 }
  0xf1   :  { %265 = vmatprep.subr.bf16.mxu1 %v231_v0 }
  0xf4   :  { %266 = vmatpush1.bf16.msra.mxu1 %v230_v8 }
  0xf5   :  { %267 = vmatprep.subr.bf16.mxu1 %v229_v10 }
  0xf8   :  { %268 = vmatpush1.bf16.msra.mxu1 %v228_v15 }
  0xf9   :  { %269 = vmatprep.subr.bf16.mxu1 %v227_v16 }
  0xfc   :  { %270 = vmatpush1.bf16.msra.mxu1 %v226_v18 }
  0xff   :  { %331 = vmatmul.mubr.msk.bf16.vlgmr.msra.gmra.mxu1 %vm251_vm1, %v348_v20 }
 0x1bf   :  { %v289_v19 = vpop.f32.mrf.mxu1 }
 0x1c0   :  { %v290_v22 = vadd.f32 %v289_v19, %v239_v21 }
 0x1c1   :  { %v291_v23 = vpop.f32.mrf.mxu1 }
 0x1c2   :  { %298 = vst [vmem:[#allocation2] sm:$0xff] %v290_v22  ;;  %v292_v24 = vadd.f32 %v291_v23, %v239_v21 }
 0x1c3   :  { %v293_v26 = vpop.f32.mrf.mxu1 }
 0x1c4   :  { %299 = vst [vmem:[#allocation2 + $0x8] sm:$0xff] %v292_v24  ;;  %v294_v27 = vadd.f32 %v293_v26, %v244_v25 }
 0x1c5   :  { %v295_v28 = vpop.f32.mrf.mxu1 }
 0x1c6   :  { %300 = vst [vmem:[#allocation2 + $0x10] sm:$0xff] %v294_v27  ;;  %v296_v29 = vadd.f32 %v295_v28, %v244_v25 }
 0x1c8   :  { %301 = vst [vmem:[#allocation2 + $0x18] sm:$0xff] %v296_v29 }
 0x1c9   :  { %360 = shalt.err (!%p357_p4)
}
 0x1ca   :  { %s373_s29 = smov 256   ;;  %s374_s30 = smov 16  }
 0x1cb   :  { %313 = dma.vmem_to_hbm [thread:$0]  %s308_s28, 512, %s474_s5, [#allocation3], %s373_s29, %s373_s29, %s374_s30  }
 0x1cc   :  { %369 = dma.done.wait [#allocation3], 512  }
 0x1cd   :  { %370 = vsyncadd [#allocation3], 4294966784 }
 0x1ce   :  { %317 = vsyncpa [#allocation3], 1 }

</bundles_post_ra>
